<compile_context>
chip_gen: v5e
topology: v5e:2x2
jax: 0.10.0
libtpu: 0.0.40
codegen_flags: <defaults>
</compile_context>

<pallas_src>
import jax
import jax.numpy as jnp
from jax.experimental import pallas as pl
from jax.experimental.pallas import tpu as pltpu


def _activation_fn(name):
    if name == "relu":
        return lambda x: jnp.maximum(x, 0.0)
    elif name == "leaky_relu":
        return lambda x: jnp.where(x >= 0, x, 0.01 * x)
    elif name == "gelu":
        # PyTorch nn.GELU default is the exact erf form.
        return lambda x: jax.nn.gelu(x, approximate=False)
    else:
        raise ValueError(f"Unknown activation: {name}")


def _round_up(n, m):
    return ((n + m - 1) // m) * m


def _make_mlp_kernel(num_hidden, act, matmul_dtype):
    """Fused MLP kernel: whole network computed on one resident batch tile in VMEM."""
    cast_hidden = matmul_dtype != jnp.float32

    def kernel(*refs):
        x_ref = refs[0]                 # (tile, input_dim)
        o_ref = refs[-1]                # (1, tile) lane-dense logits block
        p = refs[1:-1]                  # (w0, b0, w1, b1, ..., w_out, b_out)

        # Feature-major: batch lives on the 128-lane axis for the whole MLP, so every
        # intermediate vreg is fully lane-dense (feature dims here are < 128).
        x = x_ref[...]
        if x.dtype != matmul_dtype:
            x = x.astype(matmul_dtype)  # single cast of the big tile (if needed at all)
        h = x.T                         # (input_dim, tile)

        for i in range(num_hidden):
            w = p[2 * i][...]           # (out, in)   pre-cast to matmul_dtype in wrapper
            b = p[2 * i + 1][...]       # (out, 1)    f32, broadcasts over lanes
            h = jnp.dot(w, h, preferred_element_type=jnp.float32)   # (out, tile) f32
            h = act(h + b)
            # Dropout: identity at inference time.
            # TODO(synk): training-mode Dropout (stochastic masking) not implemented.
            if cast_hidden and i + 1 < num_hidden:
                h = h.astype(matmul_dtype)   # feed the next MXU matmul at full bf16 rate

        # Final Linear(hidden_last, 1): VPU multiply + cross-sublane reduce; result is
        # already lane-dense (1, tile) -> unmasked wide stores, no transpose needed.
        w_out = p[2 * num_hidden][...]       # (h_last, 1) f32
        b_out = p[2 * num_hidden + 1][...]   # (1, 1)      f32
        logits = jnp.sum(h * w_out, axis=0, keepdims=True) + b_out   # (1, tile)
        o_ref[...] = logits.astype(o_ref.dtype)

    return kernel


def interaction_classifier_forward(x, params, activation_name="relu",
                                   batch_tile=4096, matmul_dtype=jnp.float32):
    """Fused inference forward.  x: [B, input_dim] (f32 or bf16, used as-is).  Returns [B] f32."""
    B, input_dim = x.shape
    num_hidden = len(params) // 2 - 1
    act = _activation_fn(activation_name)

    # ---- batch-tile selection ------------------------------------------------------
    # Lane-dense output blocks need tile % 128 == 0.  Big tiles amortize the
    # ~0.35us/grid-step overhead; cap at 8192 so double-buffered x + f32 intermediates
    # stay a small fraction of scoped VMEM on every generation (v7x: 64 MiB physical).
    tile = max(128, min((batch_tile // 128) * 128, 8192))
    tile = min(tile, _round_up(B, 128))
    if pl.cdiv(B, tile) < 2 and B > 128:
        # Keep >= 2 grid steps so ("parallel",) can shard tiles across v7x's two TCs.
        tile = _round_up(pl.cdiv(B, 2), 128)
    num_tiles = pl.cdiv(B, tile)          # partial last tile handled by Pallas (no padding copy)

    # Pre-cast MXU-facing weights once (a few KB total); biases / final column stay f32.
    kparams = []
    for i, prm in enumerate(params):
        if i % 2 == 0 and i // 2 < num_hidden and prm.dtype != matmul_dtype:
            prm = prm.astype(matmul_dtype)
        kparams.append(prm)

    kernel = _make_mlp_kernel(num_hidden, act, matmul_dtype)

    in_specs = [pl.BlockSpec((tile, input_dim), lambda i: (i, 0))]
    for prm in kparams:
        # Tiny params: full-array blocks with constant index maps -> DMA'd once,
        # resident across the whole grid.  Bind ndim eagerly.
        in_specs.append(pl.BlockSpec(prm.shape, lambda i, nd=prm.ndim: (0,) * nd))

    out = pl.pallas_call(
        kernel,
        out_shape=jax.ShapeDtypeStruct((1, B), jnp.float32),
        grid_spec=pltpu.PrefetchScalarGridSpec(
            num_scalar_prefetch=0,
            grid=(num_tiles,),
            in_specs=in_specs,
            # Lane-dense output slab: batch on the lane axis.
            out_specs=pl.BlockSpec((1, tile), lambda i: (0, i)),
        ),
        compiler_params=pltpu.CompilerParams(
            dimension_semantics=("parallel",),   # independent batch tiles -> megacore
        ),
    )(x, *kparams)
    return out[0]                                 # (B,) == .squeeze(-1)


def init_params(key, input_dim, hidden_sizes, dtype=jnp.float32):
    """PyTorch nn.Linear default init (uniform +-1/sqrt(fan_in)) in kernel layout."""
    params = []
    dims = [input_dim] + list(hidden_sizes)
    for i in range(len(dims) - 1):
        in_d, out_d = dims[i], dims[i + 1]
        key, kw, kb = jax.random.split(key, 3)
        bound = 1.0 / float(in_d) ** 0.5
        params.append(jax.random.uniform(kw, (out_d, in_d), dtype, -bound, bound))
        params.append(jax.random.uniform(kb, (out_d, 1), dtype, -bound, bound))
    in_d = hidden_sizes[-1]
    key, kw, kb = jax.random.split(key, 3)
    bound = 1.0 / float(in_d) ** 0.5
    params.append(jax.random.uniform(kw, (in_d, 1), dtype, -bound, bound))   # w_out
    params.append(jax.random.uniform(kb, (1, 1), dtype, -bound, bound))      # b_out
    return params


def reference_forward(x, params, activation_name="relu"):
    """Pure-JAX reference matching the PyTorch forward (eval mode)."""
    act = _activation_fn(activation_name)
    num_hidden = len(params) // 2 - 1
    h = x.astype(jnp.float32)
    for i in range(num_hidden):
        w, b = params[2 * i], params[2 * i + 1]
        h = jnp.dot(h, w.T, precision=jax.lax.Precision.HIGHEST) + b[:, 0]
        h = act(h)
    w_out, b_out = params[2 * num_hidden], params[2 * num_hidden + 1]
    return (jnp.dot(h, w_out, precision=jax.lax.Precision.HIGHEST) + b_out)[:, 0]


if __name__ == "__main__":
    key = jax.random.PRNGKey(0)

    # Shapes consistent with the module: input_dim=32, hidden_sizes=[64, 32].
    input_dim = 32
    hidden_sizes = [64, 32]
    dropout = 0.1          # identity at inference; not applied
    batch = 300            # ragged on purpose: exercises partial last block (no padding copy)

    kx, kp = jax.random.split(key)
    x = jax.random.normal(kx, (batch, input_dim), jnp.float32)
    params = init_params(kp, input_dim, hidden_sizes)

    # 1) f32 path, relu, small tile -> 3-step grid with a partial last block.
    ref = reference_forward(x, params, "relu")
    out = jax.block_until_ready(
        interaction_classifier_forward(x, params, "relu", batch_tile=128))
    assert out.shape == (batch,), f"bad output shape {out.shape}"
    assert jnp.allclose(out, ref, atol=1e-4, rtol=1e-4), \
        f"f32 relu mismatch, max err {float(jnp.max(jnp.abs(out - ref)))}"

    # 2) f32 path, leaky_relu, default large tile (auto-split into 2 tiles for v7x).
    ref_l = reference_forward(x, params, "leaky_relu")
    out_l = jax.block_until_ready(
        interaction_classifier_forward(x, params, "leaky_relu"))
    assert jnp.allclose(out_l, ref_l, atol=1e-4, rtol=1e-4), \
        f"f32 leaky_relu mismatch, max err {float(jnp.max(jnp.abs(out_l - ref_l)))}"

    # 3) bf16 x at the HBM boundary + bf16 MXU operands (f32 accumulation).
    x_bf16 = x.astype(jnp.bfloat16)   # stands in for an upstream bf16 producer
    out_b = jax.block_until_ready(
        interaction_classifier_forward(x_bf16, params, "relu",
                                       matmul_dtype=jnp.bfloat16))
    assert jnp.allclose(out_b, ref, atol=5e-2, rtol=5e-2), \
        f"bf16 mismatch, max err {float(jnp.max(jnp.abs(out_b - ref)))}"

    print("KERNEL_OK")
</pallas_src>

<mosaic_0001>
module attributes {stable_mosaic.version = 11 : i64} {
  func.func @kernel(%arg0: i32, %arg1: memref<128x32xf32, #tpu.memory_space<vmem>>, %arg2: memref<64x32xf32, #tpu.memory_space<vmem>>, %arg3: memref<64x1xf32, #tpu.memory_space<vmem>>, %arg4: memref<32x64xf32, #tpu.memory_space<vmem>>, %arg5: memref<32x1xf32, #tpu.memory_space<vmem>>, %arg6: memref<32x1xf32, #tpu.memory_space<vmem>>, %arg7: memref<1x1xf32, #tpu.memory_space<vmem>>, %arg8: memref<1x128xf32, #tpu.memory_space<vmem>>) attributes {dimension_semantics = [#tpu.dimension_semantics<parallel>], iteration_bounds = array<i64: 3>, scalar_prefetch = 0 : i64, scratch_operands = 0 : i64, tpu.core_type = #tpu.core_type<tc>, window_params = [{transform_indices = @transform_0, window_bounds = array<i64: 128, 32>}, {pipeline_mode = #tpu.pipeline_mode<synchronous>, transform_indices = @transform_1, window_bounds = array<i64: 64, 32>}, {pipeline_mode = #tpu.pipeline_mode<synchronous>, transform_indices = @transform_2, window_bounds = array<i64: 64, 1>}, {pipeline_mode = #tpu.pipeline_mode<synchronous>, transform_indices = @transform_3, window_bounds = array<i64: 32, 64>}, {pipeline_mode = #tpu.pipeline_mode<synchronous>, transform_indices = @transform_4, window_bounds = array<i64: 32, 1>}, {pipeline_mode = #tpu.pipeline_mode<synchronous>, transform_indices = @transform_5, window_bounds = array<i64: 32, 1>}, {pipeline_mode = #tpu.pipeline_mode<synchronous>, transform_indices = @transform_6, window_bounds = array<i64: 1, 1>}, {transform_indices = @transform_7, window_bounds = array<i64: 1, 128>}]} {
    %c0 = arith.constant 0 : index
    %c0_0 = arith.constant 0 : index
    %0 = vector.load %arg1[%c0, %c0_0] : memref<128x32xf32, #tpu.memory_space<vmem>>, vector<128x32xf32>
    %1 = tpu.transpose %0, [1, 0] : vector<128x32xf32> -> vector<32x128xf32>
    %c0_1 = arith.constant 0 : index
    %c0_2 = arith.constant 0 : index
    %2 = vector.load %arg2[%c0_1, %c0_2] : memref<64x32xf32, #tpu.memory_space<vmem>>, vector<64x32xf32>
    %c0_3 = arith.constant 0 : index
    %c0_4 = arith.constant 0 : index
    %3 = vector.load %arg3[%c0_3, %c0_4] : memref<64x1xf32, #tpu.memory_space<vmem>>, vector<64x1xf32>
    %cst = arith.constant dense<0.000000e+00> : vector<64x128xf32>
    %4 = tpu.matmul %2, %1, %cst {dimension_numbers = #tpu.dot_dimension_numbers<[1], [0], [0], [1], [0, 0, 1, 1], [], []>} : vector<64x32xf32>, vector<32x128xf32>, vector<64x128xf32> -> vector<64x128xf32>
    %5 = vector.broadcast %3 : vector<64x1xf32> to vector<64x128xf32>
    %6 = arith.addf %4, %5 : vector<64x128xf32>
    %cst_5 = arith.constant 0.000000e+00 : f32
    %7 = vector.broadcast %cst_5 : f32 to vector<64x128xf32>
    %8 = arith.maximumf %6, %7 : vector<64x128xf32>
    %c0_6 = arith.constant 0 : index
    %c0_7 = arith.constant 0 : index
    %9 = vector.load %arg4[%c0_6, %c0_7] : memref<32x64xf32, #tpu.memory_space<vmem>>, vector<32x64xf32>
    %c0_8 = arith.constant 0 : index
    %c0_9 = arith.constant 0 : index
    %10 = vector.load %arg5[%c0_8, %c0_9] : memref<32x1xf32, #tpu.memory_space<vmem>>, vector<32x1xf32>
    %cst_10 = arith.constant dense<0.000000e+00> : vector<32x128xf32>
    %11 = tpu.matmul %9, %8, %cst_10 {dimension_numbers = #tpu.dot_dimension_numbers<[1], [0], [0], [1], [0, 0, 1, 1], [], []>} : vector<32x64xf32>, vector<64x128xf32>, vector<32x128xf32> -> vector<32x128xf32>
    %12 = vector.broadcast %10 : vector<32x1xf32> to vector<32x128xf32>
    %13 = arith.addf %11, %12 : vector<32x128xf32>
    %cst_11 = arith.constant 0.000000e+00 : f32
    %14 = vector.broadcast %cst_11 : f32 to vector<32x128xf32>
    %15 = arith.maximumf %13, %14 : vector<32x128xf32>
    %c0_12 = arith.constant 0 : index
    %c0_13 = arith.constant 0 : index
    %16 = vector.load %arg6[%c0_12, %c0_13] : memref<32x1xf32, #tpu.memory_space<vmem>>, vector<32x1xf32>
    %c0_14 = arith.constant 0 : index
    %c0_15 = arith.constant 0 : index
    %17 = vector.load %arg7[%c0_14, %c0_15] : memref<1x1xf32, #tpu.memory_space<vmem>>, vector<1x1xf32>
    %18 = vector.broadcast %16 : vector<32x1xf32> to vector<32x128xf32>
    %19 = arith.mulf %15, %18 : vector<32x128xf32>
    %cst_16 = arith.constant dense<0.000000e+00> : vector<128xf32>
    %20 = vector.multi_reduction <add>, %19, %cst_16 [0] : vector<32x128xf32> to vector<128xf32>
    %21 = vector.shape_cast %20 : vector<128xf32> to vector<1x128xf32>
    %22 = vector.broadcast %17 : vector<1x1xf32> to vector<1x128xf32>
    %23 = arith.addf %21, %22 : vector<1x128xf32>
    %c0_17 = arith.constant 0 : index
    %c0_18 = arith.constant 0 : index
    %24 = vector.load %arg8[%c0_17, %c0_18] : memref<1x128xf32, #tpu.memory_space<vmem>>, vector<1x128xf32>
    tpu.vector_store %arg8[%c0_17, %c0_18], %23 {strides = array<i32>} : memref<1x128xf32, #tpu.memory_space<vmem>>, vector<1x128xf32>,
    return
  }
  func.func @transform_0(%arg0: i32) -> (i32, i32) {
    %c0_i32 = arith.constant 0 : i32
    %c0_i32_0 = arith.constant 0 : i32
    return %arg0, %c0_i32 : i32, i32
  }
  func.func @transform_1(%arg0: i32) -> (i32, i32) {
    %c0_i32 = arith.constant 0 : i32
    %c0_i32_0 = arith.constant 0 : i32
    %c0_i32_1 = arith.constant 0 : i32
    return %c0_i32, %c0_i32_0 : i32, i32
  }
  func.func @transform_2(%arg0: i32) -> (i32, i32) {
    %c0_i32 = arith.constant 0 : i32
    %c0_i32_0 = arith.constant 0 : i32
    %c0_i32_1 = arith.constant 0 : i32
    return %c0_i32, %c0_i32_0 : i32, i32
  }
  func.func @transform_3(%arg0: i32) -> (i32, i32) {
    %c0_i32 = arith.constant 0 : i32
    %c0_i32_0 = arith.constant 0 : i32
    %c0_i32_1 = arith.constant 0 : i32
    return %c0_i32, %c0_i32_0 : i32, i32
  }
  func.func @transform_4(%arg0: i32) -> (i32, i32) {
    %c0_i32 = arith.constant 0 : i32
    %c0_i32_0 = arith.constant 0 : i32
    %c0_i32_1 = arith.constant 0 : i32
    return %c0_i32, %c0_i32_0 : i32, i32
  }
  func.func @transform_5(%arg0: i32) -> (i32, i32) {
    %c0_i32 = arith.constant 0 : i32
    %c0_i32_0 = arith.constant 0 : i32
    %c0_i32_1 = arith.constant 0 : i32
    return %c0_i32, %c0_i32_0 : i32, i32
  }
  func.func @transform_6(%arg0: i32) -> (i32, i32) {
    %c0_i32 = arith.constant 0 : i32
    %c0_i32_0 = arith.constant 0 : i32
    %c0_i32_1 = arith.constant 0 : i32
    return %c0_i32, %c0_i32_0 : i32, i32
  }
  func.func @transform_7(%arg0: i32) -> (i32, i32) {
    %c0_i32 = arith.constant 0 : i32
    %c0_i32_0 = arith.constant 0 : i32
    return %c0_i32, %arg0 : i32, i32
  }
}

</mosaic_0001>

<bundles_post_ra>
// kernel: tpu_custom_call.1
= control target key start
LH: loop header
LB: loop body
LE: loop exit
PB: predicated region body
PF: predicated region fallthrough
CT: control target
= control target key end

     0   :  { %s1143_s0 = inlined_call_operand.vmem [shape: f32[300,32], index: 0, kind: input, shape index: {}]   ;;  %s1144_s1 = inlined_call_operand.vmem [shape: f32[64,32], index: 1, kind: input, shape index: {}]   ;;  %s1145_s2 = inlined_call_operand.vmem [shape: f32[64,1], index: 2, kind: input, shape index: {}]   ;;  %s1146_s3 = inlined_call_operand.vmem [shape: f32[32,64], index: 3, kind: input, shape index: {}]   ;;  %s1147_s4 = inlined_call_operand.vmem [shape: f32[32,1], index: 4, kind: input, shape index: {}]   ;;  %s1148_s5 = inlined_call_operand.vmem [shape: f32[32,1], index: 5, kind: input, shape index: {}]   ;;  %s1149_s6 = inlined_call_operand.<no memory space> [shape: f32[1,1], index: 6, kind: input, shape index: {}]   ;;  %s1150_s7 = inlined_call_operand.hbm [shape: f32[1,300], index: 7, kind: output, shape index: {}]  }
   0x1   :  { %v12_v0 = vstv %s1149_s6 }
   0x2   :  { %13 = vst [vmem:[#allocation2] sm:$0x1] %v12_v0 }
   0x3   :  { %14 = vsyncpa [#allocation4], 0 }
   0x4   :  { %16 = vsyncpa [#allocation4 + $0x1], 0  ;;  %s901_s26 = smov 0   ;;  %s903_s27 = smov 0  }
   0x5   :  { %s905_s28 = smov 0   ;;  %s907_s29 = smov 0  }
   0x6 LB: > { %s922_s6 = sadd.s32 4294967295, %s855_s29   ;;  %s682_s30 = sadd.s32 4294967294, %s855_s29   ;;  %s855_s29 = sphi %s907_s29, %s1156_s29   ;;  %s851_s28 = sphi %s905_s28, %s1155_s28   ;;  %s847_s27 = sphi %s903_s27, %s1154_s27   ;;  %s843_s26 = sphi %s901_s26, %s1153_s26  }
   0x7   : > { %s926_s8 = sadd.s32 1, %s855_s29   ;;  %s181_s9 = sadd.s32 1, %s851_s28 }
   0x8   : > { %s178_s10 = ssub.s32 %s855_s29, %s926_s8  ;;  %p191_p0 = scmp.ne.s32.totalorder %s851_s28, %s847_s27 }
   0x9   : > { %p179_p1 = scmp.eq.s32.totalorder %s178_s10, 0  ;;  %p192_p2 = scmp.eq.s32.totalorder %s922_s6, 2 }
   0xa   : > { %p197_p3 = scmp.ne.s32.totalorder %s847_s27, %s843_s26  ;;  %p198_p4 = scmp.eq.s32.totalorder %s682_s30, 2 }
   0xb   : > { %s937_s11 = scalar_select %p179_p1, %s851_s28, %s181_s9  }
   0xc   : > { %p939_p5 = por %p192_p2, %p191_p0  ;;  %p943_p6 = por %p198_p4, %p197_p3 }
   0xd   : > { %p685_p7 = scmp.ge.s32.totalorder %s855_s29, 1  ;;  %p251_p8 = scmp.lt.s32.totalorder %s855_s29, 4 }
   0xf   : > { %p252_p9 = pnand %p685_p7, %p251_p8 }
  0x10   : > { %s686_s14 = sshll.u32 (!%p252_p9), %s922_s6, 4  ;;  %s623_s19 = scalar_lea.hbm (!%p252_p9), %s1150_s7, %s922_s6 }
  0x11   : > { %255 = sbr.rel (%p252_p9) target bundleno = 447 (0x1bf), region = 48  ;;  %p291_p10 = scmp.lt.s32.totalorder (!%p252_p9), %s686_s14, 37 }
  0x12   : > { %s627_s22 = sshll.u32 (!%p252_p9), %s623_s19, 4  ;;  %s813_s30 = scalar_lea.hbm (!%p252_p9), %s1150_s7, 3  ;;  %s628_s22 = int_to_ptr.hbm [resolvable:$true] %s627_s22 }
  0x13   : > { %s807_s24 = sshra.s32 (!%p252_p9), %s628_s22, 4  ;;  %s808_s24 = int_to_ptr.hbm [resolvable:$true] %s807_s24 }
  0x14   : > { %p814_p0 = scmp.lt.s32.totalorder (!%p252_p9), %s808_s24, %s1150_s7 }
  0x16   : > { %s1158_s14 = smov (!%p291_p10, %s686_s14), 37  ;;  %vm372_vm0 = vcmask 261120   ;;  %v331_v10 = vld [vmem:[%s1145_s2 + $0x38] sm:$0xff]  ;;  %v329_v11 = vld [vmem:[%s1145_s2 + $0x28] sm:$0xff]  ;;  %v857_v13 = vmov 0   ;;  %v330_v15 = vld [vmem:[%s1145_s2 + $0x30] sm:$0xff] }
  0x17   : > { %s687_s15 = sshll.u32 %s1158_s14, 3  ;;  %790 = vset.pattern.permute.xlu0 %v857_v13  ;;  %791 = vset.pattern.permute.xlu1 %v857_v13  ;;  %v328_v16 = vld [vmem:[%s1145_s2 + $0x20] sm:$0xff]  ;;  %v325_v19 = vld [vmem:[%s1145_s2 + $0x8] sm:$0xff]  ;;  %v500_v24 = vld [vmem:[%s1147_s4 + $0x10] sm:$0xff]  ;;  %vm522_vm1 = vcmask 523264  }
  0x18   : > { %s953_s18 = scalar_lea.vmem %s1143_s0, %s687_s15  ;;  %369 = vperm.xlu0 %790, %v331_v10   ;;  %359 = vperm.xlu1 %791, %v329_v11   ;;  %v324_v20 = vld [vmem:[%s1145_s2] sm:$0xff]  ;;  %v499_v23 = vld [vmem:[%s1147_s4 + $0x8] sm:$0xff]  ;;  %v319_v26 = vld [vmem:[%s1144_s1 + $0x18] sm:$0xff]  ;;  %s284_s15 = sand.u32 1, %s847_s27  }
  0x19   : > { %v315_v1 = vld [vmem:[%s953_s18 + $0x78] sm:$0xff]  ;;  %v314_v2 = vld [vmem:[%s953_s18 + $0x70] sm:$0xff]  ;;  %v313_v3 = vld [vmem:[%s953_s18 + $0x68] sm:$0xff]  ;;  %792 = vset.pattern.permute.xlu2 %v857_v13  ;;  %s285_s20 = scalar_lea.vmem [#allocation3], %s284_s15  ;;  %s615_s23 = scalar_lea.sflag [#allocation4], %s284_s15 }
  0x1a   : > { %719 = vmatpush.xpose.msk.msra.mxu3 %vm372_vm0, %v315_v1  ;;  %718 = vmatpush.xpose.msk.msra.mxu2 %vm372_vm0, %v315_v1  ;;  %v312_v4 = vld [vmem:[%s953_s18 + $0x60] sm:$0xff]  ;;  %v311_v5 = vld [vmem:[%s953_s18 + $0x58] sm:$0xff]  ;;  %v310_v6 = vld [vmem:[%s953_s18 + $0x50] sm:$0xff]  ;;  %s625_s21 = sshll.u32 %s285_s20, 4  ;;  %s626_s21 = int_to_ptr.vmem [resolvable:$true] %s625_s21 }
  0x1b   : > { %688 = vmatpush.xpose.msk.msra.mxu0 %vm372_vm0, %v315_v1  ;;  %v309_v7 = vld [vmem:[%s953_s18 + $0x48] sm:$0xff]  ;;  %v308_v8 = vld [vmem:[%s953_s18 + $0x40] sm:$0xff]  ;;  %v307_v9 = vld [vmem:[%s953_s18 + $0x38] sm:$0xff] }
  0x1c   : > { %v306_v12 = vld [vmem:[%s953_s18 + $0x30] sm:$0xff]  ;;  %v305_v14 = vld [vmem:[%s953_s18 + $0x28] sm:$0xff]  ;;  %v304_v17 = vld [vmem:[%s953_s18 + $0x20] sm:$0xff] }
  0x1d   : > { %v303_v18 = vld [vmem:[%s953_s18 + $0x18] sm:$0xff]  ;;  %v302_v21 = vld [vmem:[%s953_s18 + $0x10] sm:$0xff]  ;;  %v301_v22 = vld [vmem:[%s953_s18 + $0x8] sm:$0xff] }
  0x1e   : > { %721 = vmatpush.xpose.msk.msra.mxu3 %vm372_vm0, %v314_v2  ;;  %720 = vmatpush.xpose.msk.msra.mxu2 %vm372_vm0, %v314_v2  ;;  %v300_v25 = vld [vmem:[%s953_s18] sm:$0xff]  ;;  %v317_v27 = vld [vmem:[%s1144_s1 + $0x8] sm:$0xff]  ;;  %v327_v31 = vld [vmem:[%s1145_s2 + $0x18] sm:$0xff]  ;;  %s809_s18 = scalar_lea.hbm %s808_s24, 1 }
  0x1f   : > { %689 = vmatpush.xpose.msk.msra.mxu0 %vm372_vm0, %v314_v2  ;;  %v568_v28 = vld [vmem:[%s1148_s5] sm:$0xff]  ;;  %v569_v30 = vld [vmem:[%s1148_s5 + $0x8] sm:$0xff]  ;;  %349 = vperm.xlu2 %792, %v327_v31   ;;  %v318_v33 = vld [vmem:[%s1144_s1 + $0x10] sm:$0xff]  ;;  %p810_p11 = scmp.ne.s32.totalorder %s808_s24, %s809_s18  ;;  %p815_p1 = scmp.lt.s32.totalorder %s813_s30, %s809_s18 }
  0x20   : > { %364 = vperm.xlu0 %790, %v330_v15   ;;  %354 = vperm.xlu1 %791, %v328_v16   ;;  %v316_v29 = vld [vmem:[%s1144_s1] sm:$0xff]  ;;  %v326_v34 = vld [vmem:[%s1145_s2 + $0x10] sm:$0xff]  ;;  %v571_v35 = vld [vmem:[%s1148_s5 + $0x18] sm:$0xff] }
  0x21   : > { %v320_v32 = vld [vmem:[%s1144_s1 + $0x20] sm:$0xff]  ;;  %v321_v37 = vld [vmem:[%s1144_s1 + $0x28] sm:$0xff]  ;;  %v322_v39 = vld [vmem:[%s1144_s1 + $0x30] sm:$0xff]  ;;  %p811_p12 = pnand %p810_p11, %p939_p5  ;;  %p816_p2 = por %p815_p1, %p814_p0 }
  0x22   : > { %723 = vmatpush.xpose.msk.msra.mxu3 %vm372_vm0, %v313_v3  ;;  %722 = vmatpush.xpose.msk.msra.mxu2 %vm372_vm0, %v313_v3  ;;  %v572_v36 = vld [vmem:[#allocation2] sm:$0x1]  ;;  %v501_v40 = vld [vmem:[%s1147_s4 + $0x18] sm:$0xff]  ;;  %v570_v42 = vld [vmem:[%s1148_s5 + $0x10] sm:$0xff] }
  0x23   : > { %690 = vmatpush.xpose.msk.msra.mxu0 %vm372_vm0, %v313_v3  ;;  %v498_v38 = vld [vmem:[%s1147_s4] sm:$0xff]  ;;  %v323_v41 = vld [vmem:[%s1144_s1 + $0x38] sm:$0xff]  ;;  %v496_v13 = vld [vmem:[%s1146_s3 + $0x10] sm:$0xff]  ;;  %p812_p13 = pneg %p811_p12 }
  0x24   : > { %v494_v11 = vld [vmem:[%s1146_s3] sm:$0xff] }
  0x25   : > { %p817_p3 = pnand %p816_p2, %p812_p13 }
  0x26   : > { %725 = vmatpush.xpose.msk.msra.mxu3 %vm372_vm0, %v312_v4  ;;  %724 = vmatpush.xpose.msk.msra.mxu2 %vm372_vm0, %v312_v4 }
  0x27   : > { %691 = vmatpush.xpose.msk.msra.mxu0 %vm372_vm0, %v312_v4  ;;  %344 = vperm.xlu2 %792, %v326_v34  }
  0x28   : > { %339 = vperm.xlu0 %790, %v325_v19   ;;  %334 = vperm.xlu1 %791, %v324_v20  }
  0x2a   : > { %727 = vmatpush.xpose.msk.msra.mxu3 %vm372_vm0, %v311_v5  ;;  %726 = vmatpush.xpose.msk.msra.mxu2 %vm372_vm0, %v311_v5 }
  0x2b   : > { %692 = vmatpush.xpose.msk.msra.mxu0 %vm372_vm0, %v311_v5 }
  0x2e   : > { %729 = vmatpush.xpose.msk.msra.mxu3 %vm372_vm0, %v310_v6  ;;  %728 = vmatpush.xpose.msk.msra.mxu2 %vm372_vm0, %v310_v6 }
  0x2f   : > { %693 = vmatpush.xpose.msk.msra.mxu0 %vm372_vm0, %v310_v6  ;;  %504 = vperm.xlu2 %792, %v498_v38  }
  0x30   : > { %509 = vperm.xlu0 %790, %v499_v23   ;;  %514 = vperm.xlu1 %791, %v500_v24  }
  0x32   : > { %731 = vmatpush.xpose.msk.msra.mxu3 %vm372_vm0, %v309_v7  ;;  %730 = vmatpush.xpose.msk.msra.mxu2 %vm372_vm0, %v309_v7 }
  0x33   : > { %694 = vmatpush.xpose.msk.msra.mxu0 %vm372_vm0, %v309_v7 }
  0x36   : > { %733 = vmatpush.xpose.msk.msra.mxu3 %vm372_vm0, %v308_v8  ;;  %732 = vmatpush.xpose.msk.msra.mxu2 %vm372_vm0, %v308_v8 }
  0x37   : > { %695 = vmatpush.xpose.msk.msra.mxu0 %vm372_vm0, %v308_v8  ;;  %519 = vperm.xlu2 %792, %v501_v40  }
  0x38   : > { %575 = vperm.xlu0 %790, %v568_v28   ;;  %580 = vperm.xlu1 %791, %v569_v30  }
  0x3a   : > { %735 = vmatpush.xpose.msk.msra.mxu3 %vm372_vm0, %v307_v9  ;;  %734 = vmatpush.xpose.msk.msra.mxu2 %vm372_vm0, %v307_v9 }
  0x3b   : > { %696 = vmatpush.xpose.msk.msra.mxu0 %vm372_vm0, %v307_v9 }
  0x3e   : > { %737 = vmatpush.xpose.msk.msra.mxu3 %vm372_vm0, %v306_v12  ;;  %736 = vmatpush.xpose.msk.msra.mxu2 %vm372_vm0, %v306_v12 }
  0x3f   : > { %697 = vmatpush.xpose.msk.msra.mxu0 %vm372_vm0, %v306_v12  ;;  %585 = vperm.xlu2 %792, %v570_v42   ;;  %v495_v12 = vld [vmem:[%s1146_s3 + $0x8] sm:$0xff] }
  0x40   : > { %590 = vperm.xlu0 %790, %v571_v35   ;;  %608 = vperm.xlu1 %791, %v572_v36  }
  0x42   : > { %739 = vmatpush.xpose.msk.msra.mxu3 %vm372_vm0, %v305_v14  ;;  %738 = vmatpush.xpose.msk.msra.mxu2 %vm372_vm0, %v305_v14 }
  0x43   : > { %698 = vmatpush.xpose.msk.msra.mxu0 %vm372_vm0, %v305_v14  ;;  %v497_v14 = vld [vmem:[%s1146_s3 + $0x18] sm:$0xff] }
  0x46   : > { %741 = vmatpush.xpose.msk.msra.mxu3 %vm372_vm0, %v304_v17  ;;  %740 = vmatpush.xpose.msk.msra.mxu2 %vm372_vm0, %v304_v17 }
  0x47   : > { %699 = vmatpush.xpose.msk.msra.mxu0 %vm372_vm0, %v304_v17 }
  0x4a   : > { %743 = vmatpush.xpose.msk.msra.mxu3 %vm372_vm0, %v303_v18  ;;  %742 = vmatpush.xpose.msk.msra.mxu2 %vm372_vm0, %v303_v18 }
  0x4b   : > { %700 = vmatpush.xpose.msk.msra.mxu0 %vm372_vm0, %v303_v18 }
  0x4e   : > { %745 = vmatpush.xpose.msk.msra.mxu3 %vm372_vm0, %v302_v21  ;;  %744 = vmatpush.xpose.msk.msra.mxu2 %vm372_vm0, %v302_v21 }
  0x4f   : > { %701 = vmatpush.xpose.msk.msra.mxu0 %vm372_vm0, %v302_v21 }
  0x52   : > { %747 = vmatpush.xpose.msk.msra.mxu3 %vm372_vm0, %v301_v22  ;;  %746 = vmatpush.xpose.msk.msra.mxu2 %vm372_vm0, %v301_v22 }
  0x53   : > { %702 = vmatpush.xpose.msk.msra.mxu0 %vm372_vm0, %v301_v22 }
  0x56   : > { %749 = vmatpush.xpose.msk.msra.mxu3 %vm372_vm0, %v300_v25  ;;  %748 = vmatpush.xpose.msk.msra.mxu2 %vm372_vm0, %v300_v25 }
  0x57   : > { %703 = vmatpush.xpose.msk.msra.mxu0 %vm372_vm0, %v300_v25 }
  0x59   : > { %707 = vmatmul.msk.f32.vlgmr.msra.gmra.mxu3 %vm372_vm0, %v319_v26  ;;  %705 = vmatmul.msk.f32.vlgmr.msra.gmra.mxu2 %vm372_vm0, %v317_v27 }
  0x5a   : > { %704 = vmatmul.msk.f32.vlgmr.msra.gmra.mxu0 %vm372_vm0, %v316_v29 }
  0x61   : > { %708 = vmatmul.msk.f32.gmra.mxu3 %vm372_vm0, %v320_v32  ;;  %706 = vmatmul.msk.f32.gmra.mxu2 %vm372_vm0, %v318_v33 }
  0x69   : > { %709 = vmatmul.msk.f32.gmra.mxu3 %vm372_vm0, %v321_v37 }
  0x71   : > { %710 = vmatmul.msk.f32.gmra.mxu3 %vm372_vm0, %v322_v39 }
  0x79   : > { %711 = vmatmul.msk.f32.gmra.mxu3 %vm372_vm0, %v323_v41  ;;  %v350_v50 = vpop.permute.xlu2 %349 }
  0x81   : > { %v345_v63 = vpop.permute.xlu2 %344 }
  0x89   : > { %v505_v16 = vpop.permute.xlu2 %504 }
  0x8a   : > { %v370_v46 = vpop.permute.xlu0 %369  ;;  %v360_v47 = vpop.permute.xlu1 %359 }
  0x91   : > { %v520_v20 = vpop.permute.xlu2 %519 }
  0x92   : > { %v365_v51 = vpop.permute.xlu0 %364  ;;  %v355_v55 = vpop.permute.xlu1 %354 }
  0x99   : > { %v586_v31 = vpop.permute.xlu2 %585 }
  0x9a   : > { %v340_v2 = vpop.permute.xlu0 %339  ;;  %v335_v6 = vpop.permute.xlu1 %334 }
  0xa2   : > { %v510_v17 = vpop.permute.xlu0 %509  ;;  %v515_v19 = vpop.permute.xlu1 %514 }
  0xaa   : > { %v576_v25 = vpop.permute.xlu0 %575  ;;  %v581_v29 = vpop.permute.xlu1 %580 }
  0xb2   : > { %v591_v38 = vpop.permute.xlu0 %590 }
  0xd7   : > { %v462_v3 = vpop.f32.mrf.mxu0 }
  0xd8   : > { %v463_v7 = vadd.f32 %v462_v3, %v335_v6 }
  0xda   : > { %v486_v10 = vmax.f32 %v463_v7, 0.0 }
  0xdc   : > { %v471_v43 = vpop.f32.mrf.mxu3  ;;  %v465_v49 = vpop.f32.mrf.mxu2 }
  0xdd   : > { %v472_v61 = vadd.f32 %v471_v43, %v350_v50  ;;  %v466_v5 = vadd.f32 %v465_v49, %v340_v2 }
  0xdf   : > { %v489_v4 = vmax.f32 %v472_v61, 0.0  ;;  %v487_v9 = vmax.f32 %v466_v5, 0.0 }
  0xe4   : > { %v474_v44 = vpop.f32.mrf.mxu3  ;;  %v468_v60 = vpop.f32.mrf.mxu2 }
  0xe5   : > { %v475_v58 = vadd.f32 %v474_v44, %v355_v55  ;;  %v469_v1 = vadd.f32 %v468_v60, %v345_v63 }
  0xe7   : > { %v490_v0 = vmax.f32 %v475_v58, 0.0  ;;  %v488_v8 = vmax.f32 %v469_v1, 0.0 }
  0xec   : > { %v477_v45 = vpop.f32.mrf.mxu3 }
  0xed   : > { %v478_v56 = vadd.f32 %v477_v45, %v360_v47 }
  0xef   : > { %v491_v62 = vmax.f32 %v478_v56, 0.0 }
  0xf4   : > { %v480_v48 = vpop.f32.mrf.mxu3 }
  0xf5   : > { %v481_v53 = vadd.f32 %v480_v48, %v365_v51 }
  0xf7   : > { %v492_v59 = vmax.f32 %v481_v53, 0.0 }
  0xfc   : > { %v483_v52 = vpop.f32.mrf.mxu3 }
  0xfd   : > { %v484_v54 = vadd.f32 %v483_v52, %v370_v46  ;;  %v609_v46 = vpop.permute.xlu1 %608 }
  0xfe   : > { %v611_v48 = vperm.slane %v609_v46, 0 }
  0xff   : > { %v493_v57 = vmax.f32 %v484_v54, 0.0 }
 0x101   : > { %543 = vmatpush.msra.mxu1 %v493_v57 }
 0x103   : > { %544 = vmatpush.msra.mxu1 %v492_v59 }
 0x105   : > { %545 = vmatpush.msra.mxu1 %v491_v62 }
 0x107   : > { %546 = vmatpush.msra.mxu1 %v490_v0 }
 0x109   : > { %547 = vmatpush.msra.mxu1 %v489_v4 }
 0x10b   : > { %548 = vmatpush.msra.mxu1 %v488_v8 }
 0x10d   : > { %549 = vmatpush.msra.mxu1 %v487_v9 }
 0x10f   : > { %550 = vmatpush.msra.mxu1 %v486_v10 }
 0x110   : > { %712 = vmatmul.msk.f32.vlgmr.msra.gmra.mxu1 %vm522_vm1, %v494_v11 }
 0x118   : > { %713 = vmatmul.msk.f32.gmra.mxu1 %vm522_vm1, %v495_v12 }
 0x120   : > { %714 = vmatmul.msk.f32.gmra.mxu1 %vm522_vm1, %v496_v13 }
 0x128   : > { %715 = vmatmul.msk.f32.gmra.mxu1 %vm522_vm1, %v497_v14 }
 0x18d   : > { %v552_v15 = vpop.f32.mrf.mxu1 }
 0x18e   : > { %v553_v23 = vadd.f32 %v552_v15, %v505_v16 }
 0x190   : > { %v564_v27 = vmax.f32 %v553_v23, 0.0 }
 0x192   : > { %v593_v33 = vmul.f32 %v576_v25, %v564_v27 }
 0x195   : > { %v555_v18 = vpop.f32.mrf.mxu1 }
 0x196   : > { %v556_v21 = vadd.f32 %v555_v18, %v510_v17 }
 0x198   : > { %v565_v26 = vmax.f32 %v556_v21, 0.0 }
 0x19a   : > { %v594_v30 = vmul.f32 %v581_v29, %v565_v26 }
 0x19c   : > { %v597_v36 = vadd.f32 %v594_v30, %v593_v33 }
 0x19d   : > { %v558_v22 = vpop.f32.mrf.mxu1 }
 0x19e   : > { %v559_v24 = vadd.f32 %v558_v22, %v515_v19 }
 0x1a0   : > { %v566_v28 = vmax.f32 %v559_v24, 0.0 }
 0x1a2   : > { %v595_v34 = vmul.f32 %v586_v31, %v566_v28 }
 0x1a4   : > { %v598_v39 = vadd.f32 %v597_v36, %v595_v34 }
 0x1a5   : > { %v561_v32 = vpop.f32.mrf.mxu1 }
 0x1a6   : > { %v562_v35 = vadd.f32 %v561_v32, %v520_v20 }
 0x1a8   : > { %v567_v37 = vmax.f32 %v562_v35, 0.0 }
 0x1aa   : > { %v596_v40 = vmul.f32 %v591_v38, %v567_v37 }
 0x1ac   : > { %v599_v41 = vadd.f32 %v598_v39, %v596_v40 }
 0x1ae   : > { %v600_v42 = vrot.slane %v599_v41, 4 }
 0x1b0   : > { %v601_v43 = vadd.f32 %v600_v42, %v599_v41 }
 0x1b2   : > { %v602_v44 = vrot.slane %v601_v43, 2 }
 0x1b4   : > { %v603_v45 = vadd.f32 %v602_v44, %v601_v43 }
 0x1b6   : > { %v604_v47 = vrot.slane %v603_v45, 1 }
 0x1b8   : > { %v605_v49 = vadd.f32 %v604_v47, %v603_v45 }
 0x1ba   : > { %v612_v50 = vadd.f32 %v611_v48, %v605_v49 }
 0x1bc   : > { %613 = vst [vmem:[%s285_s20] sm:$0x1] %v612_v50 }
 0x1bd   : > { %820 = shalt.err (!%p817_p3)
}
 0x1be   : > { %750 = dma.vmem_to_hbm [thread:$0]  (%p939_p5), %s626_s21, 16, %s628_s22, %s615_s23  }
 0x1bf PF: > { %p756_p4 = scmp.ge.s32.totalorder %s855_s29, 2  ;;  %s639_s14 = sand.u32 1, %s843_s26  }
 0x1c0   : > { %s640_s15 = scalar_lea.sflag [#allocation4], %s639_s14 }
 0x1c1   : > { %p753_p7 = pnand %p756_p4, %p943_p6 }
 0x1c3   : > { %p754_p8 = pneg %p753_p7 }
 0x1c5   : > { %838 = dma.done.wait (%p754_p8), %s640_s15, 16  }
 0x1c6   : > { %840 = vsyncadd (%p754_p8), %s640_s15, 4294967280  ;;  %p19_p9 = scmp.ge.s32.totalorder %s926_s8, 5   ;;  %s1153_s26 = smov %s847_s27 }
 0x1c7   : > { %s1154_s27 = smov %s851_s28  ;;  %s1155_s28 = smov %s937_s11 }
 0x1c8   : > { %s1156_s29 = smov %s926_s8  ;;  %21 = sbr.rel (!%p19_p9) target bundleno = 6 (0x6), region = 83 }
 0x1cd   :  { %645 = vsyncpa [#allocation4], 1 }
 0x1ce   :  { %647 = vsyncpa [#allocation4 + $0x1], 1 }

</bundles_post_ra>
